<compile_context>
chip_gen: v7x
topology: tpu7x:2x2x1
jax: 0.10.0
libtpu: 0.0.40
codegen_flags: <defaults>
</compile_context>

<pallas_src>
import functools

import jax
import jax.numpy as jnp
from jax.experimental import pallas as pl
from jax.experimental.pallas import tpu as pltpu

PATCH = 4                  # swin patch size (power of two)
EMBED = 192                # swin_large stage-0 embed dim
FEAT = 1536                # swin_large final feature dim (input to fc1)
HID = 512                  # fc1 output
OUT = 1                    # fc2 output
PDIM = PATCH * PATCH * 3   # 48


# ---------------------------------------------------------------------------
# Kernel 1: per-image phase-grouped patch sums, straight off the raw NCHW image.
#   out[c, ph, pw] = sum over {h % 4 == ph, w % 4 == pw} of img[c, h, w]
# which equals the sum over all tokens of the im2col patch matrix column (ph, pw, c).
# ---------------------------------------------------------------------------
def _pool_kernel(img_ref, out_ref):
    C, H, W = img_ref.shape   # (C, H, W) bf16, one batch element (batch dim squeezed)

    # One-hot phase selectors built in-register (PATCH is a power of two -> mask with &).
    h_phase = jax.lax.broadcasted_iota(jnp.int32, (PATCH, H), 1) & (PATCH - 1)
    h_row = jax.lax.broadcasted_iota(jnp.int32, (PATCH, H), 0)
    sel_h = jnp.where(h_phase == h_row, 1.0, 0.0).astype(jnp.bfloat16)   # (PATCH, H)

    w_phase = jax.lax.broadcasted_iota(jnp.int32, (PATCH, W), 1) & (PATCH - 1)
    w_row = jax.lax.broadcasted_iota(jnp.int32, (PATCH, W), 0)
    sel_w = jnp.where(w_phase == w_row, 1.0, 0.0)                         # (PATCH, W) f32

    for c in range(C):
        # Group rows by h-phase: (PATCH, H) @ (H, W) -> (PATCH, W). bf16 in, f32 accumulate.
        rows = jnp.dot(sel_h, img_ref[c], preferred_element_type=jnp.float32)
        # Group columns by w-phase: contract over W (A @ B^T pattern) -> (PATCH, PATCH) = [ph, pw].
        out_ref[c] = jax.lax.dot_general(
            rows, sel_w,
            dimension_numbers=(((1,), (1,)), ((), ())),
            preferred_element_type=jnp.float32)


# ---------------------------------------------------------------------------
# Kernel 2: batched head. pooled(B,48) -> 192 -> 1536 -> 512 -> 1, all with M = B.
# ---------------------------------------------------------------------------
def _head_kernel(inv_ntok,
                 pooled_ref, wpat_ref, bpat_ref, wproj_ref, bproj_ref,
                 w1_ref, b1_ref, w2_ref, b2_ref, o_ref):
    # GAP mean of the patch vectors; the per-token patch-embed bias averages back to itself.
    mean_p = (pooled_ref[...] * inv_ntok).astype(jnp.bfloat16)                       # (B, 48)
    emb = jnp.dot(mean_p, wpat_ref[...],
                  preferred_element_type=jnp.float32) + bpat_ref[...]                # (B, 192)
    feat = jnp.dot(emb.astype(jnp.bfloat16), wproj_ref[...],
                   preferred_element_type=jnp.float32) + bproj_ref[...]              # (B, 1536)
    h = jnp.dot(feat.astype(jnp.bfloat16), w1_ref[...],
                preferred_element_type=jnp.float32) + b1_ref[...]                    # (B, 512)
    # fc2 (512 -> 1) as VPU multiply + lane reduction (avoids an N=1 MXU matmul).
    o_ref[...] = (jnp.sum(h * w2_ref[...].astype(jnp.float32), axis=-1, keepdims=True)
                  + b2_ref[...])


def init_params(key):
    ks = jax.random.split(key, 8)
    s = 0.02
    return {
        "w_patch": jax.random.normal(ks[0], (PDIM, EMBED), jnp.float32) * s,
        "b_patch": jax.random.normal(ks[1], (1, EMBED), jnp.float32) * s,
        "w_proj": jax.random.normal(ks[2], (EMBED, FEAT), jnp.float32) * s,
        "b_proj": jax.random.normal(ks[3], (1, FEAT), jnp.float32) * s,
        "w_fc1": jax.random.normal(ks[4], (FEAT, HID), jnp.float32) * s,
        "b_fc1": jax.random.normal(ks[5], (1, HID), jnp.float32) * s,
        "w_fc2": jax.random.normal(ks[6], (HID, OUT), jnp.float32) * s,
        "b_fc2": jax.random.normal(ks[7], (1, OUT), jnp.float32) * s,
    }


def swinvit_linear_forward(x_nchw, params):
    B, C, H, W = x_nchw.shape
    assert C == 3 and H % PATCH == 0 and W % PATCH == 0
    n_tok = (H // PATCH) * (W // PATCH)

    # Cast to bf16 (halves the dominant HBM read).  NO im2col / transpose: the pooling kernel
    # reads the raw NCHW image directly.
    x = x_nchw.astype(jnp.bfloat16)

    # --- Kernel 1: per-image phase-grouped patch sums; grid over batch only. ---
    pooled = pl.pallas_call(
        _pool_kernel,
        out_shape=jax.ShapeDtypeStruct((B, C, PATCH, PATCH), jnp.float32),
        grid_spec=pltpu.PrefetchScalarGridSpec(
            num_scalar_prefetch=0,
            grid=(B,),
            in_specs=[pl.BlockSpec((None, C, H, W), lambda b: (b, 0, 0, 0))],
            out_specs=pl.BlockSpec((None, C, PATCH, PATCH), lambda b: (b, 0, 0, 0)),
        ),
        compiler_params=pltpu.CompilerParams(
            # Batch axis parallel: both TCs on v7x when B >= 2 (single-core for B == 1, accepted).
            dimension_semantics=("parallel",),
            # Footprint: 2x double-buffered (3, H, W->pad128) bf16 image + tiny output
            # (~0.7 MiB at 224x224); 8 MiB documents ample headroom on all generations.
            vmem_limit_bytes=8 * 1024 * 1024,
        ),
    )(x)

    # (B, C, PATCH, PATCH) -> (B, 48): contiguous reshape, no data movement.
    pooled_flat = pooled.reshape(B, PDIM)

    # Reorder w_patch rows once (trace-time, 48x192) from the im2col (ph, pw, c) ordering to the
    # kernel's (c, ph, pw) pooled ordering; bf16 weights for the MXU matmuls, biases stay f32.
    w_patch_perm = (params["w_patch"].reshape(PATCH, PATCH, 3, EMBED)
                    .transpose(2, 0, 1, 3).reshape(PDIM, EMBED).astype(jnp.bfloat16))
    w_proj = params["w_proj"].astype(jnp.bfloat16)
    w_fc1 = params["w_fc1"].astype(jnp.bfloat16)
    w_fc2_row = params["w_fc2"].T.astype(jnp.bfloat16)   # (1, HID)

    inv = lambda i: (0, 0)   # single-step grid: every block is the full array

    # --- Kernel 2: batched head (patch embed + stand-in projection + fc1 + fc2), M = B. ---
    out = pl.pallas_call(
        functools.partial(_head_kernel, 1.0 / n_tok),
        out_shape=jax.ShapeDtypeStruct((B, OUT), jnp.float32),
        grid_spec=pltpu.PrefetchScalarGridSpec(
            num_scalar_prefetch=0,
            grid=(1,),
            in_specs=[
                pl.BlockSpec((B, PDIM), inv),      # pooled patch sums
                pl.BlockSpec((PDIM, EMBED), inv),  # w_patch (rows permuted to pooled order)
                pl.BlockSpec((1, EMBED), inv),     # b_patch
                pl.BlockSpec((EMBED, FEAT), inv),  # w_proj (stand-in for swin stages)
                pl.BlockSpec((1, FEAT), inv),      # b_proj
                pl.BlockSpec((FEAT, HID), inv),    # w_fc1
                pl.BlockSpec((1, HID), inv),       # b_fc1
                pl.BlockSpec((1, HID), inv),       # w_fc2 (as a row)
                pl.BlockSpec((1, OUT), inv),       # b_fc2
            ],
            out_specs=pl.BlockSpec((B, OUT), inv),
        ),
        compiler_params=pltpu.CompilerParams(
            dimension_semantics=("arbitrary",),
            # ~2.1 MiB of bf16 weights (x2 buffers) + tiny activations; 16 MiB leaves headroom
            # even on v7x's 64 MiB VMEM.
            vmem_limit_bytes=16 * 1024 * 1024,
        ),
    )(pooled_flat, w_patch_perm, params["b_patch"], w_proj, params["b_proj"],
      w_fc1, params["b_fc1"], w_fc2_row, params["b_fc2"])
    return out  # (B, 1)


def reference_forward(x_nchw, params):
    # pure-JAX f32 reference of the same (simplified-backbone) computation
    B, C, H, W = x_nchw.shape
    nH, nW = H // PATCH, W // PATCH
    patches = (
        x_nchw.reshape(B, C, nH, PATCH, nW, PATCH)
        .transpose(0, 2, 4, 3, 5, 1)
        .reshape(B, nH * nW, PDIM)
    )
    tokens = patches @ params["w_patch"] + params["b_patch"]
    pooled = tokens.mean(axis=1)
    feat = pooled @ params["w_proj"] + params["b_proj"]
    h = feat @ params["w_fc1"] + params["b_fc1"]
    return h @ params["w_fc2"] + params["b_fc2"]


if __name__ == "__main__":
    key = jax.random.PRNGKey(0)
    k_x, k_p = jax.random.split(key)

    # small image consistent with the module's conv-patch front end (3 channels, /4 patches)
    x = jax.random.normal(k_x, (2, 3, 32, 32), jnp.float32)  # NCHW, like PyTorch
    params = init_params(k_p)

    out = jax.block_until_ready(swinvit_linear_forward(x, params))
    ref = reference_forward(x, params)

    assert out.shape == (2, 1)
    # bf16 weights/activations (f32 accumulation) vs f32 reference -> loosened tolerance
    assert jnp.allclose(out, ref, atol=1e-2, rtol=1e-1), (out, ref)

    print("KERNEL_OK")
</pallas_src>

<mosaic_0001>
module attributes {stable_mosaic.version = 11 : i64} {
  func.func @_pool_kernel(%arg0: i32, %arg1: memref<1x3x32x32xbf16, #tpu.memory_space<vmem>>, %arg2: memref<1x3x4x4xf32, #tpu.memory_space<vmem>>) attributes {dimension_semantics = [#tpu.dimension_semantics<parallel>], iteration_bounds = array<i64: 2>, scalar_prefetch = 0 : i64, scratch_operands = 0 : i64, tpu.core_type = #tpu.core_type<tc>, window_params = [{transform_indices = @transform_0, window_bounds = array<i64: 1, 3, 32, 32>}, {transform_indices = @transform_1, window_bounds = array<i64: 1, 3, 4, 4>}]} {
    %0 = tpu.iota {dimensions = array<i32: 1>} : vector<4x32xi32>
    %c3_i32 = arith.constant 3 : i32
    %1 = vector.broadcast %c3_i32 : i32 to vector<4x32xi32>
    %2 = arith.andi %0, %1 : vector<4x32xi32>
    %3 = tpu.iota {dimensions = array<i32: 0>} : vector<4x32xi32>
    %4 = arith.cmpi eq, %2, %3 : vector<4x32xi32>
    %cst = arith.constant 1.000000e+00 : f32
    %cst_0 = arith.constant 0.000000e+00 : f32
    %5 = vector.broadcast %cst : f32 to vector<4x32xf32>
    %6 = vector.broadcast %cst_0 : f32 to vector<4x32xf32>
    %7 = arith.select %4, %5, %6 : vector<4x32xi1>, vector<4x32xf32>
    %8 = arith.truncf %7 : vector<4x32xf32> to vector<4x32xbf16>
    %9 = tpu.iota {dimensions = array<i32: 1>} : vector<4x32xi32>
    %c3_i32_1 = arith.constant 3 : i32
    %10 = vector.broadcast %c3_i32_1 : i32 to vector<4x32xi32>
    %11 = arith.andi %9, %10 : vector<4x32xi32>
    %12 = tpu.iota {dimensions = array<i32: 0>} : vector<4x32xi32>
    %13 = arith.cmpi eq, %11, %12 : vector<4x32xi32>
    %cst_2 = arith.constant 1.000000e+00 : f32
    %cst_3 = arith.constant 0.000000e+00 : f32
    %14 = vector.broadcast %cst_2 : f32 to vector<4x32xf32>
    %15 = vector.broadcast %cst_3 : f32 to vector<4x32xf32>
    %16 = arith.select %13, %14, %15 : vector<4x32xi1>, vector<4x32xf32>
    %c0 = arith.constant 0 : index
    %c0_4 = arith.constant 0 : index
    %c0_5 = arith.constant 0 : index
    %c0_6 = arith.constant 0 : index
    %17 = vector.load %arg1[%c0, %c0_4, %c0_5, %c0_6] : memref<1x3x32x32xbf16, #tpu.memory_space<vmem>>, vector<1x1x32x32xbf16>
    %18 = vector.shape_cast %17 : vector<1x1x32x32xbf16> to vector<32x32xbf16>
    %cst_7 = arith.constant dense<0.000000e+00> : vector<4x32xf32>
    %19 = tpu.matmul %8, %18, %cst_7 {dimension_numbers = #tpu.dot_dimension_numbers<[1], [0], [0], [1], [0, 0, 1, 1], [], []>} : vector<4x32xbf16>, vector<32x32xbf16>, vector<4x32xf32> -> vector<4x32xf32>
    %cst_8 = arith.constant dense<0.000000e+00> : vector<4x4xf32>
    %20 = tpu.matmul %19, %16, %cst_8 {dimension_numbers = #tpu.dot_dimension_numbers<[1], [1], [0], [0], [0, 0, 1, 0], [], []>} : vector<4x32xf32>, vector<4x32xf32>, vector<4x4xf32> -> vector<4x4xf32>
    %c0_9 = arith.constant 0 : index
    %c0_10 = arith.constant 0 : index
    %c0_11 = arith.constant 0 : index
    %c0_12 = arith.constant 0 : index
    %21 = vector.load %arg2[%c0_9, %c0_10, %c0_11, %c0_12] : memref<1x3x4x4xf32, #tpu.memory_space<vmem>>, vector<1x1x4x4xf32>
    %22 = vector.shape_cast %21 : vector<1x1x4x4xf32> to vector<4x4xf32>
    %23 = vector.shape_cast %20 : vector<4x4xf32> to vector<1x1x4x4xf32>
    tpu.vector_store %arg2[%c0_9, %c0_10, %c0_11, %c0_12], %23 {strides = array<i32>} : memref<1x3x4x4xf32, #tpu.memory_space<vmem>>, vector<1x1x4x4xf32>,
    %c0_13 = arith.constant 0 : index
    %c1 = arith.constant 1 : index
    %c0_14 = arith.constant 0 : index
    %c0_15 = arith.constant 0 : index
    %24 = vector.load %arg1[%c0_13, %c1, %c0_14, %c0_15] : memref<1x3x32x32xbf16, #tpu.memory_space<vmem>>, vector<1x1x32x32xbf16>
    %25 = vector.shape_cast %24 : vector<1x1x32x32xbf16> to vector<32x32xbf16>
    %cst_16 = arith.constant dense<0.000000e+00> : vector<4x32xf32>
    %26 = tpu.matmul %8, %25, %cst_16 {dimension_numbers = #tpu.dot_dimension_numbers<[1], [0], [0], [1], [0, 0, 1, 1], [], []>} : vector<4x32xbf16>, vector<32x32xbf16>, vector<4x32xf32> -> vector<4x32xf32>
    %cst_17 = arith.constant dense<0.000000e+00> : vector<4x4xf32>
    %27 = tpu.matmul %26, %16, %cst_17 {dimension_numbers = #tpu.dot_dimension_numbers<[1], [1], [0], [0], [0, 0, 1, 0], [], []>} : vector<4x32xf32>, vector<4x32xf32>, vector<4x4xf32> -> vector<4x4xf32>
    %c0_18 = arith.constant 0 : index
    %c1_19 = arith.constant 1 : index
    %c0_20 = arith.constant 0 : index
    %c0_21 = arith.constant 0 : index
    %28 = vector.load %arg2[%c0_18, %c1_19, %c0_20, %c0_21] : memref<1x3x4x4xf32, #tpu.memory_space<vmem>>, vector<1x1x4x4xf32>
    %29 = vector.shape_cast %28 : vector<1x1x4x4xf32> to vector<4x4xf32>
    %30 = vector.shape_cast %27 : vector<4x4xf32> to vector<1x1x4x4xf32>
    tpu.vector_store %arg2[%c0_18, %c1_19, %c0_20, %c0_21], %30 {strides = array<i32>} : memref<1x3x4x4xf32, #tpu.memory_space<vmem>>, vector<1x1x4x4xf32>,
    %c0_22 = arith.constant 0 : index
    %c2 = arith.constant 2 : index
    %c0_23 = arith.constant 0 : index
    %c0_24 = arith.constant 0 : index
    %31 = vector.load %arg1[%c0_22, %c2, %c0_23, %c0_24] : memref<1x3x32x32xbf16, #tpu.memory_space<vmem>>, vector<1x1x32x32xbf16>
    %32 = vector.shape_cast %31 : vector<1x1x32x32xbf16> to vector<32x32xbf16>
    %cst_25 = arith.constant dense<0.000000e+00> : vector<4x32xf32>
    %33 = tpu.matmul %8, %32, %cst_25 {dimension_numbers = #tpu.dot_dimension_numbers<[1], [0], [0], [1], [0, 0, 1, 1], [], []>} : vector<4x32xbf16>, vector<32x32xbf16>, vector<4x32xf32> -> vector<4x32xf32>
    %cst_26 = arith.constant dense<0.000000e+00> : vector<4x4xf32>
    %34 = tpu.matmul %33, %16, %cst_26 {dimension_numbers = #tpu.dot_dimension_numbers<[1], [1], [0], [0], [0, 0, 1, 0], [], []>} : vector<4x32xf32>, vector<4x32xf32>, vector<4x4xf32> -> vector<4x4xf32>
    %c0_27 = arith.constant 0 : index
    %c2_28 = arith.constant 2 : index
    %c0_29 = arith.constant 0 : index
    %c0_30 = arith.constant 0 : index
    %35 = vector.load %arg2[%c0_27, %c2_28, %c0_29, %c0_30] : memref<1x3x4x4xf32, #tpu.memory_space<vmem>>, vector<1x1x4x4xf32>
    %36 = vector.shape_cast %35 : vector<1x1x4x4xf32> to vector<4x4xf32>
    %37 = vector.shape_cast %34 : vector<4x4xf32> to vector<1x1x4x4xf32>
    tpu.vector_store %arg2[%c0_27, %c2_28, %c0_29, %c0_30], %37 {strides = array<i32>} : memref<1x3x4x4xf32, #tpu.memory_space<vmem>>, vector<1x1x4x4xf32>,
    return
  }
  func.func @transform_0(%arg0: i32) -> (i32, i32, i32, i32) {
    %c0_i32 = arith.constant 0 : i32
    %c0_i32_0 = arith.constant 0 : i32
    %c0_i32_1 = arith.constant 0 : i32
    %c0_i32_2 = arith.constant 0 : i32
    return %arg0, %c0_i32, %c0_i32_0, %c0_i32_1 : i32, i32, i32, i32
  }
  func.func @transform_1(%arg0: i32) -> (i32, i32, i32, i32) {
    %c0_i32 = arith.constant 0 : i32
    %c0_i32_0 = arith.constant 0 : i32
    %c0_i32_1 = arith.constant 0 : i32
    %c0_i32_2 = arith.constant 0 : i32
    return %arg0, %c0_i32, %c0_i32_0, %c0_i32_1 : i32, i32, i32, i32
  }
}

</mosaic_0001>

<bundles_post_ra>
// kernel: tpu_custom_call.1
= control target key start
LH: loop header
LB: loop body
LE: loop exit
PB: predicated region body
PF: predicated region fallthrough
CT: control target
= control target key end

     0   :  { %6 = vsyncpa [#allocation3], 0  ;;  %s1082_s0 = inlined_call_operand.hbm [shape: bf16[2,3,32,32], index: 0, kind: input, shape index: {}]   ;;  %s1083_s1 = inlined_call_operand.hbm [shape: f32[2,3,4,4], index: 1, kind: output, shape index: {}]  }
   0x1   :  { %8 = vsyncpa [#allocation3 + $0x1], 0 }
   0x2   :  { %9 = vsyncpa [#allocation4], 0 }
   0x3   :  { %11 = vsyncpa [#allocation4 + $0x1], 0  ;;  %s899_s6 = smov 0   ;;  %s901_s7 = smov 0  }
   0x4   :  { %s903_s8 = smov 0   ;;  %s905_s9 = smov 0  }
   0x5 LB: > { %s920_s10 = sadd.s32 4294967295, %s879_s9   ;;  %s633_s11 = sadd.s32 4294967294, %s879_s9   ;;  %s879_s9 = sphi %s905_s9, %s1095_s9   ;;  %s875_s8 = sphi %s903_s8, %s1094_s8   ;;  %s871_s7 = sphi %s901_s7, %s1093_s7   ;;  %s867_s6 = sphi %s899_s6, %s1092_s6  }
   0x6   : > { %s924_s12 = sadd.s32 1, %s879_s9   ;;  %s24_s13 = sadd.s32 1, %s875_s8 }
   0x7   : > { %s21_s14 = ssub.s32 %s879_s9, %s924_s12  ;;  %p31_p0 = scmp.ne.s32.totalorder %s875_s8, %s871_s7 }
   0x8   : > { %p22_p1 = scmp.eq.s32.totalorder %s21_s14, 0  ;;  %p32_p2 = scmp.eq.s32.totalorder %s879_s9, 0 }
   0x9   : > { %p37_p3 = scmp.ne.s32.totalorder %s871_s7, %s867_s6  ;;  %p38_p4 = scmp.eq.s32.totalorder %s920_s10, 0 }
   0xa   : > { %s936_s15 = scalar_select %p22_p1, %s875_s8, %s24_s13  }
   0xb   : > { %p33_p5 = por %p32_p2, %p31_p0  ;;  %p938_p6 = por %p38_p4, %p37_p3 }
   0xc   : > { %p61_p7 = scmp.eq.s32.totalorder %s920_s10, 1  ;;  %p67_p8 = scmp.eq.s32.totalorder %s633_s11, 1 }
   0xd   : > { %p737_p10 = scmp.lt.s32.totalorder %s879_s9, 2  ;;  %s87_s19 = sand.u32 1, %s875_s8  }
   0xe   : > { %p945_p11 = por %p61_p7, %p31_p0  ;;  %p949_p12 = por %p67_p8, %p37_p3 }
   0xf   : > { %s721_s20 = smul.u32 768, %s879_s9  ;;  %p960_p13 = pnand %p737_p10, %p33_p5 }
  0x10   : > { %s1086_s17 = scalar_select %p945_p11, 1, 0 }
  0x11   : > { %s1087_s18 = scalar_select %p949_p12, 1, 0 }
  0x12   : > { %s720_s21 = smul.u32 48, %s87_s19  ;;  %s958_s24 = scalar_lea.hbm %s1082_s0, %s721_s20 }
  0x13   : > { %s966_s28 = scalar_lea.sflag [#allocation3], %s87_s19  ;;  %s783_s29 = scalar_lea.hbm %s958_s24, 768 }
  0x14   : > { %s91_s26 = scalar_lea.vmem [#allocation2], %s720_s21  ;;  %p784_p0 = scmp.ne.s32.totalorder %s958_s24, %s783_s29 }
  0x15   : > { %s98_s27 = sshll.u32 %s91_s26, 4  ;;  %p785_p1 = pneg %p960_p13  ;;  %s964_s27 = int_to_ptr.vmem [resolvable:$true] %s98_s27 }
  0x16   : > { %s788_s3 = scalar_lea.hbm %s1082_s0, 1536  ;;  %p789_p4 = scmp.lt.u32.totalorder %s958_s24, %s1082_s0 }
  0x17   : > { %p786_p2 = pnand %p785_p1, %p784_p0  ;;  %p790_p5 = scmp.lt.u32.totalorder %s788_s3, %s783_s29 }
  0x18   : > { %p792_p8 = scmp.lt.u32.totalorder %s783_s29, %s958_s24 }
  0x19   : > { %p787_p3 = pneg %p786_p2  ;;  %p791_p7 = por %p790_p5, %p789_p4 }
  0x1b   : > { %p793_p10 = por %p792_p8, %p791_p7 }
  0x1d   : > { %p794_p9 = pnand %p793_p10, %p787_p3 }
  0x1f   : > { %797 = shalt.err (!%p794_p9)
}
  0x20   : > { %s798_s11 = scalar_lea.vmem %s964_s27, 768  ;;  %s881_s13 = smov [#allocation2]  }
  0x21   : > { %p799_p0 = scmp.ne.s32.totalorder %s964_s27, %s798_s11  ;;  %s803_s14 = sshll.u32 %s881_s13, 4  ;;  %s804_s14 = int_to_ptr.vmem [resolvable:$false] %s803_s14 }
  0x22   : > { %s805_s19 = scalar_lea.vmem %s804_s14, 1536  ;;  %p806_p11 = scmp.lt.s32.totalorder %s964_s27, %s804_s14 }
  0x23   : > { %p801_p2 = pnand %p799_p0, %p785_p1  ;;  %p807_p4 = scmp.lt.s32.totalorder %s805_s19, %s798_s11 }
  0x25   : > { %p802_p12 = pneg %p801_p2  ;;  %p808_p5 = por %p807_p4, %p806_p11 }
  0x27   : > { %p809_p7 = pnand %p808_p5, %p802_p12 }
  0x29   : > { %812 = shalt.err (!%p809_p7)
}
  0x2a   : > { %s882_s20 = smov 64   ;;  %s883_s21 = smov 4  }
  0x2b   : > { %732 = dma.hbm_to_vmem [thread:$0]  (!%p960_p13), %s958_s24, 768, %s964_s27, %s966_s28, %s882_s20, %s882_s20, %s883_s21  }
  0x2c   : > { %p637_p9 = scmp.ge.s32.totalorder %s879_s9, 1  ;;  %p106_p1 = scmp.lt.s32.totalorder %s879_s9, 3 }
  0x2e   : > { %p107_p3 = pnand %p637_p9, %p106_p1 }
  0x2f   : > { %s997_s22 = sand.u32 (!%p107_p3), 1, %s871_s7  }
  0x30   : > { %110 = sbr.rel (%p107_p3) target bundleno = 733 (0x2dd), region = 24  ;;  %s113_s26 = scalar_lea.sflag (!%p107_p3), [#allocation3], %s997_s22 }
  0x31   : > { %s722_s23 = smul.u32 (!%p107_p3), 48, %s997_s22 }
  0x33   : > { %s1001_s29 = scalar_lea.vmem (!%p107_p3), [#allocation2], %s722_s23 }
  0x37   : > { %858 = dma.done.wait (%p938_p6), %s113_s26, 768  }
  0x38   : > { %860 = vsyncadd (%p938_p6), %s113_s26, 4294966528  ;;  %v136_v0 = vlaneseq  ;;  %v884_v1 = vmov 0.0   ;;  %vm885_vm0 = vmmov 0   ;;  %vm160_vm2 = vcmask 261120   ;;  %v777_v5 = vld [vmem:[%s1001_s29] sm:$0xff]   ;;  %v778_v7 = vld [vmem:[%s1001_s29 + $0x8] sm:$0xff]  }
  0x39   : > { %681 = vmatprep.subr.bf16.mxu0 %v884_v1  ;;  %685 = vmatprep.mubr.msk.bf16.mxu0 %vm885_vm0, %v884_v1  ;;  %v779_v9 = vld [vmem:[%s1001_s29 + $0x10] sm:$0xff]   ;;  %v780_v13 = vld [vmem:[%s1001_s29 + $0x18] sm:$0xff]   ;;  %v781_v15 = vld [vmem:[%s1001_s29 + $0x20] sm:$0xff]   ;;  %s723_s16 = smul.u32 12, %s997_s22  ;;  %vm280_vm3 = vcmask 27648   ;;  %s547_s3 = scalar_lea.sflag [#allocation4], %s997_s22 }
  0x3a   : > { %v137_v2 = vand.u32 127, %v136_v0  ;;  %v140_v3 = vshrl.u32 %v136_v0, 7  ;;  %689 = vmatprep.subr.mxu1 %v884_v1  ;;  %691 = vmatprep.mubr.msk.f32.mxu1 %vm885_vm0, %v884_v1  ;;  %v782_v16 = vld [vmem:[%s1001_s29 + $0x28] sm:$0xff]   ;;  %s724_s27 = smul.u32 192, %s920_s10  ;;  %p1089_p11 = scmp.ne.s32.totalorder %s1086_s17, 0 }
  0x3b   : > { %682 = vmatpush3.bf16.msra.mxu0 %v777_v5  ;;  %s134_s24 = scalar_lea.vmem [#allocation5], %s723_s16  ;;  %s886_s10 = smov [#allocation5]  }
  0x3c   : > { %v138_v4 = vand.u32 3, %v137_v2  ;;  %683 = vmatprep.subr.bf16.mxu0 %v884_v1  ;;  %s560_s25 = sshll.u32 %s134_s24, 4  ;;  %s1037_s2 = scalar_lea.hbm %s1083_s1, %s724_s27  ;;  %s1032_s25 = int_to_ptr.vmem [resolvable:$true] %s560_s25 }
  0x3d   : > { %s813_s4 = scalar_lea.vmem %s1032_s25, 192  ;;  %s817_s5 = sshll.u32 %s886_s10, 4  ;;  %s818_s5 = int_to_ptr.vmem [resolvable:$false] %s817_s5 }
  0x3e   : > { %vm141_vm1 = vcmp.eq.s32.totalorder %v138_v4, %v140_v3  ;;  %p814_p6 = scmp.ne.s32.totalorder %s1032_s25, %s813_s4  ;;  %s819_s11 = scalar_lea.vmem %s818_s5, 384 }
  0x3f   : > { %v142_v6 = vsel %vm141_vm1, 1.0, %v884_v1  ;;  %684 = vmatpush3.bf16.msra.mxu0 %v778_v7  ;;  %p820_p8 = scmp.lt.s32.totalorder %s1032_s25, %s818_s5  ;;  %p821_p10 = scmp.lt.s32.totalorder %s819_s11, %s813_s4 }
  0x40   : > { %690 = vmatpush3.xpose.msk.msra.mxu1 %vm160_vm2, %v142_v6  ;;  %v143_v8 = vpack.c.bf16 %v142_v6, %v142_v6  ;;  %702 = vmatprep.subr.mxu0 %v884_v1  ;;  %p815_p12 = pnand %p814_p6, %p1089_p11 }
  0x41   : > { %694 = vmatprep.subr.bf16.mxu1 %v884_v1  ;;  %p822_p0 = por %p821_p10, %p820_p8 }
  0x42   : > { %686 = vmatmul.mubr.msk.bf16.vlgmr.msra.gmra.mrb[0].mxu0 %vm160_vm2, %v143_v8  ;;  %p816_p13 = pneg %p815_p12 }
  0x43   : > { %704 = vmatprep.mubr.msk.f32.mxu0 %vm885_vm0, %v884_v1 }
  0x44   : > { %p823_p2 = pnand %p822_p0, %p816_p13 }
  0x48   : > { %703 = vmatpush3.xpose.msk.msra.mxu0 %vm160_vm2, %v142_v6 }
  0x49   : > { %715 = vmatprep.subr.mxu0 %v884_v1 }
 0x115   : > { %v198_v10 = vpop.f32.mrb[0].mxu0 }
 0x116   : > { %v687_v11 = vpop.f32.mrb[1].mxu0  ;;  %692 = vmatmul.mubr.msk.f32.vlgmr.msra.gmra.mrb[0].mxu1 %vm160_vm2, %v198_v10 }
 0x117   : > { %695 = vmatpush3.bf16.msra.mxu1 %v779_v9  ;;  %v201_v12 = vpop.f32.mrb[2].mxu0  ;;  %698 = vmatprep.mubr.msk.bf16.mxu1 %vm885_vm0, %v884_v1 }
 0x118   : > { %v688_v14 = vpop.f32.mrb[3].mxu0  ;;  %696 = vmatprep.subr.bf16.mxu1 %v884_v1 }
 0x11b   : > { %697 = vmatpush3.bf16.msra.mxu1 %v780_v13 }
 0x11c   : > { %707 = vmatprep.subr.bf16.mxu1 %v884_v1 }
 0x11e   : > { %699 = vmatmul.mubr.msk.bf16.vlgmr.msra.gmra.mrb[4].mxu1 %vm160_vm2, %v143_v8 }
 0x11f   : > { %708 = vmatpush3.bf16.msra.mxu1 %v781_v15  ;;  %711 = vmatprep.mubr.msk.bf16.mxu1 %vm885_vm0, %v884_v1 }
 0x120   : > { %709 = vmatprep.subr.bf16.mxu1 %v884_v1 }
 0x123   : > { %710 = vmatpush3.bf16.msra.mxu1 %v782_v16 }
 0x126   : > { %712 = vmatmul.mubr.msk.bf16.vlgmr.msra.gmra.mrb[8].mxu1 %vm160_vm2, %v143_v8 }
 0x1e9   : > { %v276_v17 = vpop.f32.mrb[0].mxu1 }
 0x1ea   : > { %281 = vst.msk [vmem:[%s134_s24] sm:$0xf] %vm280_vm3, %v276_v17  ;;  %v693_v18 = vpop.f32.mrb[1].mxu1 }
 0x1f1   : > { %v333_v19 = vpop.f32.mrb[4].mxu1 }
 0x1f2   : > { %v700_v20 = vpop.f32.mrb[5].mxu1  ;;  %705 = vmatmul.mubr.msk.f32.vlgmr.msra.gmra.mrb[4].mxu0 %vm160_vm2, %v333_v19 }
 0x1f3   : > { %v336_v21 = vpop.f32.mrb[6].mxu1  ;;  %716 = vmatpush3.xpose.msk.msra.mxu0 %vm160_vm2, %v142_v6  ;;  %717 = vmatprep.mubr.msk.f32.mxu0 %vm885_vm0, %v884_v1 }
 0x1f4   : > { %v701_v22 = vpop.f32.mrb[7].mxu1 }
 0x1f9   : > { %v465_v23 = vpop.f32.mrb[8].mxu1 }
 0x1fa   : > { %v713_v24 = vpop.f32.mrb[9].mxu1  ;;  %718 = vmatmul.mubr.msk.f32.vlgmr.msra.gmra.mrb[6].mxu0 %vm160_vm2, %v465_v23 }
 0x1fb   : > { %v468_v25 = vpop.f32.mrb[10].mxu1 }
 0x1fc   : > { %v714_v26 = vpop.f32.mrb[11].mxu1 }
 0x2c5   : > { %v408_v27 = vpop.f32.mrb[4].mxu0 }
 0x2c6   : > { %652 = vst.msk [vmem:[%s134_s24 + $0x4] sm:$0xf] %vm280_vm3, %v408_v27  ;;  %v706_v28 = vpop.f32.mrb[5].mxu0 }
 0x2cd   : > { %v540_v29 = vpop.f32.mrb[6].mxu0 }
 0x2ce   : > { %662 = vst.msk [vmem:[%s134_s24 + $0x8] sm:$0xf] %vm280_vm3, %v540_v29  ;;  %v719_v30 = vpop.f32.mrb[7].mxu0 }
 0x2cf   : > { %826 = shalt.err (!%p823_p2)
}
 0x2d0   : > { %s827_s13 = scalar_lea.hbm %s1037_s2, 192  ;;  %s831_s20 = scalar_lea.hbm %s1083_s1, 384 }
 0x2d1   : > { %p828_p4 = scmp.ne.s32.totalorder %s1037_s2, %s827_s13  ;;  %p832_p9 = scmp.lt.u32.totalorder %s1037_s2, %s1083_s1 }
 0x2d2   : > { %p833_p1 = scmp.lt.u32.totalorder %s831_s20, %s827_s13  ;;  %p835_p6 = scmp.lt.u32.totalorder %s827_s13, %s1037_s2 }
 0x2d3   : > { %p829_p5 = pnand %p828_p4, %p1089_p11 }
 0x2d4   : > { %p834_p3 = por %p833_p1, %p832_p9 }
 0x2d5   : > { %p830_p7 = pneg %p829_p5 }
 0x2d6   : > { %p836_p12 = por %p835_p6, %p834_p3 }
 0x2d8   : > { %p837_p13 = pnand %p836_p12, %p830_p7 }
 0x2da   : > { %840 = shalt.err (!%p837_p13)
}
 0x2db   : > { %s887_s26 = smov 64   ;;  %s888_s29 = smov 4  }
 0x2dc   : > { %727 = dma.vmem_to_hbm [thread:$0]  (%p1089_p11), %s1032_s25, 192, %s1037_s2, %s547_s3, %s887_s26, %s887_s26, %s888_s29  }
 0x2dd PF: > { %s575_s16 = sand.u32 1, %s867_s6   ;;  %p1090_p8 = scmp.ne.s32.totalorder %s1087_s18, 0 }
 0x2de   : > { %p1091_p10 = scmp.ge.s32.totalorder %s879_s9, 2  ;;  %s576_s24 = scalar_lea.sflag [#allocation4], %s575_s16 }
 0x2e0   : > { %p734_p0 = pnand %p1091_p10, %p1090_p8 }
 0x2e2   : > { %862 = dma.done.wait (!%p734_p0), %s576_s24, 192  }
 0x2e3   : > { %864 = vsyncadd (!%p734_p0), %s576_s24, 4294967104  ;;  %p14_p2 = scmp.ge.s32.totalorder %s924_s12, 4   ;;  %s1092_s6 = smov %s871_s7 }
 0x2e4   : > { %s1093_s7 = smov %s875_s8  ;;  %s1094_s8 = smov %s936_s15 }
 0x2e5   : > { %s1095_s9 = smov %s924_s12  ;;  %16 = sbr.rel (!%p14_p2) target bundleno = 5 (0x5), region = 73 }
 0x2ec   :  { %581 = vsyncpa [#allocation3], 1 }
 0x2ed   :  { %583 = vsyncpa [#allocation3 + $0x1], 1 }
 0x2ee   :  { %584 = vsyncpa [#allocation4], 1 }
 0x2ef   :  { %586 = vsyncpa [#allocation4 + $0x1], 1 }

</bundles_post_ra>
